<compile_context>
chip_gen: v5e
topology: v5e:2x2
jax: 0.10.0
libtpu: 0.0.40
codegen_flags: <defaults>
</compile_context>

<pallas_src>
import functools

import jax
import jax.numpy as jnp
from jax.experimental import pallas as pl
from jax.experimental.pallas import tpu as pltpu


# ----------------------------- small helpers --------------------------------

def _round_up(x, m):
    return ((x + m - 1) // m) * m


def _vmem_capacity_bytes():
    try:
        return int(pltpu.get_tpu_info().vmem_capacity_bytes)
    except Exception:
        return 64 << 20  # conservative: v7x per-TensorCore VMEM


def _default_act_dtype():
    # bf16 VPU/EUP exists on v6e/v7x; v5e and older keep the f32 path.
    try:
        kind = jax.devices()[0].device_kind.lower()
    except Exception:
        return jnp.float32
    if "v6" in kind or "v7" in kind:
        return jnp.bfloat16
    return jnp.float32


def _silu(x):
    # silu(x) = x*sigmoid(x) = 0.5*x*(1 + tanh(0.5*x)) -> a single EUP op.
    half = jnp.asarray(0.5, x.dtype)
    one = jnp.asarray(1.0, x.dtype)
    return half * x * (one + jnp.tanh(half * x))


def _block_body(x, w1t, b1, w2t, b2, act_dtype):
    """One pre-activation residual block on an f32 row-tile `x`."""
    wdtype = w1t.dtype
    y = _silu(x.astype(act_dtype))
    y = jnp.dot(y.astype(wdtype), w1t, preferred_element_type=jnp.float32) + b1
    y = _silu(y.astype(act_dtype))
    y = jnp.dot(y.astype(wdtype), w2t, preferred_element_type=jnp.float32) + b2
    return x + y


# ------------------------------- kernels -------------------------------------

def _resident_kernel(x_ref, w1t_ref, b1_ref, w2t_ref, b2_ref, o_ref,
                     *, num_residual, act_dtype):
    """All R weight blocks resident in VMEM; R-loop unrolled (R small, static)."""
    x = x_ref[...].astype(jnp.float32)
    for r in range(num_residual):
        x = _block_body(x, w1t_ref[r], b1_ref[r], w2t_ref[r], b2_ref[r], act_dtype)
    o_ref[...] = x.astype(o_ref.dtype)


def _streaming_kernel(x_ref, w1t_ref, b1_ref, w2t_ref, b2_ref, o_ref, acc_ref,
                      *, act_dtype):
    """Weights streamed over the trailing `r` grid axis; carry in VMEM scratch."""
    r = pl.program_id(1)

    @pl.when(r == 0)
    def _():
        acc_ref[...] = x_ref[...].astype(jnp.float32)

    x = _block_body(acc_ref[...], w1t_ref[0], b1_ref[0], w2t_ref[0], b2_ref[0],
                    act_dtype)
    acc_ref[...] = x

    @pl.when(r == pl.num_programs(1) - 1)
    def _():
        o_ref[...] = x.astype(o_ref.dtype)


# ------------------------------- wrapper --------------------------------------

def residual_stack(x, params, *, tile_m=None, force_streaming=False,
                   act_dtype=None):
    """x: [N, F] float32.  params: dict of stacked weights (see init_params)."""
    N, F = x.shape
    w1t, b1, w2t, b2 = params["w1t"], params["b1"], params["w2t"], params["b2"]
    R = int(w1t.shape[0])
    if act_dtype is None:
        act_dtype = _default_act_dtype()

    # ---- lane-dense feature dim (multiple of 128); zero padding is exact ----
    F_pad = _round_up(F, 128)
    if F_pad != F:
        pf = F_pad - F
        x = jnp.pad(x, ((0, 0), (0, pf)))
        w1t = jnp.pad(w1t, ((0, 0), (0, pf), (0, pf)))
        w2t = jnp.pad(w2t, ((0, 0), (0, pf), (0, pf)))
        b1 = jnp.pad(b1, ((0, 0), (0, 0), (0, pf)))
        b2 = jnp.pad(b2, ((0, 0), (0, 0), (0, pf)))

    # ---- VMEM budget (queried capacity; includes Pallas double-buffering) ----
    wbytes = jnp.dtype(w1t.dtype).itemsize
    vmem_cap = _vmem_capacity_bytes()
    vmem_budget = int(0.80 * vmem_cap)

    resident_w_fp = 2 * (2 * R * F_pad * F_pad * wbytes + 2 * R * F_pad * 4)
    streaming_w_fp = 2 * (2 * F_pad * F_pad * wbytes + 2 * F_pad * 4)
    use_streaming = bool(force_streaming) or resident_w_fp > int(0.45 * vmem_budget)
    weight_fp = streaming_w_fp if use_streaming else resident_w_fp

    # Per row: x + out (double-buffered, 16 B) + f32 carry / y / cast temps (~32 B).
    per_row_bytes = 48 * F_pad

    # ---- row tiling: big tiles, multiple of 16, even tile count (2 TCs) -----
    if tile_m is None:
        avail = max(vmem_budget - weight_fp, 1 << 20)
        tile_cap = max(16, (avail // per_row_bytes) // 16 * 16)
        target = 2048 if F_pad <= 256 else (1024 if F_pad <= 512 else 512)
        target = min(target, tile_cap)
        num_tiles = max(2, pl.cdiv(N, target))
        if num_tiles % 2:
            num_tiles += 1  # balanced across the 2 TensorCores on v7x
        tile_m = min(_round_up(pl.cdiv(N, num_tiles), 16), tile_cap)
    tile_m = max(16, _round_up(int(tile_m), 16))

    N_pad = _round_up(N, tile_m)
    if N_pad != N:
        x = jnp.pad(x, ((0, N_pad - N), (0, 0)))
    row_tiles = N_pad // tile_m

    vmem_limit = int(min(int(0.90 * vmem_cap),
                         weight_fp + per_row_bytes * tile_m + (4 << 20)))

    weight_bytes_once = 2 * R * F_pad * F_pad * wbytes + 2 * R * F_pad * 4
    cost = pl.CostEstimate(
        flops=int(4 * N_pad * F_pad * F_pad * R),
        transcendentals=int(2 * R * N_pad * F_pad),  # one tanh per SiLU
        bytes_accessed=int(2 * N_pad * F_pad * 4
                           + (row_tiles if use_streaming else 1) * weight_bytes_once),
    )

    if use_streaming:
        kernel = functools.partial(_streaming_kernel, act_dtype=act_dtype)
        grid = (row_tiles, R)
        in_specs = [
            pl.BlockSpec((tile_m, F_pad), lambda i, r: (i, 0)),          # x
            pl.BlockSpec((1, F_pad, F_pad), lambda i, r: (r, 0, 0)),     # w1t
            pl.BlockSpec((1, 1, F_pad), lambda i, r: (r, 0, 0)),         # b1
            pl.BlockSpec((1, F_pad, F_pad), lambda i, r: (r, 0, 0)),     # w2t
            pl.BlockSpec((1, 1, F_pad), lambda i, r: (r, 0, 0)),         # b2
        ]
        out_specs = pl.BlockSpec((tile_m, F_pad), lambda i, r: (i, 0))
        scratch_shapes = [pltpu.VMEM((tile_m, F_pad), jnp.float32)]
        dim_sem = ("parallel", "arbitrary")
    else:
        kernel = functools.partial(_resident_kernel, num_residual=R,
                                   act_dtype=act_dtype)
        grid = (row_tiles,)
        in_specs = [
            pl.BlockSpec((tile_m, F_pad), lambda i: (i, 0)),             # x
            pl.BlockSpec((R, F_pad, F_pad), lambda i: (0, 0, 0)),        # w1t
            pl.BlockSpec((R, 1, F_pad), lambda i: (0, 0, 0)),            # b1
            pl.BlockSpec((R, F_pad, F_pad), lambda i: (0, 0, 0)),        # w2t
            pl.BlockSpec((R, 1, F_pad), lambda i: (0, 0, 0)),            # b2
        ]
        out_specs = pl.BlockSpec((tile_m, F_pad), lambda i: (i, 0))
        scratch_shapes = []
        dim_sem = ("parallel",)

    out = pl.pallas_call(
        kernel,
        out_shape=jax.ShapeDtypeStruct((N_pad, F_pad), x.dtype),
        grid_spec=pltpu.PrefetchScalarGridSpec(
            num_scalar_prefetch=0,
            grid=grid,
            in_specs=in_specs,
            out_specs=out_specs,
            scratch_shapes=scratch_shapes,
        ),
        compiler_params=pltpu.CompilerParams(
            dimension_semantics=dim_sem,
            vmem_limit_bytes=vmem_limit,
        ),
        cost_estimate=cost,
    )(x, w1t, b1, w2t, b2)

    return out[:N, :F]


# ----------------------------- parameter init -------------------------------

def _orthogonal(key, n):
    """Deterministic orthogonal square matrix (like nn.init.orthogonal_)."""
    a = jax.random.normal(key, (n, n), dtype=jnp.float32)
    q, r = jnp.linalg.qr(a)
    return q * jnp.sign(jnp.diag(r))[None, :]


def init_params(key, num_features, num_residual, *, zero_init=True,
                weight_dtype=jnp.bfloat16):
    """Mirror Residual.reset_parameters: linear1 orthogonal; linear2 zeros
    (zero_init=True) or orthogonal; biases zeros.  Weights are pre-transposed
    to [in, out] (PyTorch Linear computes x @ W.T) and stored in bf16 so the
    MXU runs at full rate (accumulation stays f32 in the kernel)."""
    F = num_features
    keys = jax.random.split(key, 2 * num_residual)
    w1 = jnp.stack([_orthogonal(keys[2 * i], F) for i in range(num_residual)])
    if zero_init:
        w2 = jnp.zeros((num_residual, F, F), jnp.float32)
    else:
        w2 = jnp.stack([_orthogonal(keys[2 * i + 1], F)
                        for i in range(num_residual)])
    return {
        "w1t": jnp.swapaxes(w1, -1, -2).astype(weight_dtype),
        "w2t": jnp.swapaxes(w2, -1, -2).astype(weight_dtype),
        "b1": jnp.zeros((num_residual, 1, F), jnp.float32),
        "b2": jnp.zeros((num_residual, 1, F), jnp.float32),
    }


def residual_stack_ref(x, params):
    """Pure-JAX f32 reference (exact sigmoid form) for correctness checking."""
    w1t = params["w1t"].astype(jnp.float32)
    w2t = params["w2t"].astype(jnp.float32)
    for r in range(w1t.shape[0]):
        y = jax.nn.silu(x)
        y = y @ w1t[r] + params["b1"][r]
        y = jax.nn.silu(y)
        y = y @ w2t[r] + params["b2"][r]
        x = x + y
    return x


# ---------------------------------- main -------------------------------------

if __name__ == "__main__":
    key = jax.random.PRNGKey(0)
    k_x, k_p, k_b1, k_b2 = jax.random.split(key, 4)

    # Small but representative: N not a multiple of the tile, F lane-dense.
    N, F, R = 100, 128, 2
    x = jax.random.normal(k_x, (N, F), dtype=jnp.float32)

    # zero_init=False so linear2 is non-trivial; add small random biases so the
    # bias path is exercised too (the module zero-inits them at construction,
    # but the forward semantics must hold for any parameter values).
    params = init_params(k_p, F, R, zero_init=False)
    params["b1"] = 0.1 * jax.random.normal(k_b1, (R, 1, F), dtype=jnp.float32)
    params["b2"] = 0.1 * jax.random.normal(k_b2, (R, 1, F), dtype=jnp.float32)

    ref = residual_stack_ref(x, params)

    # Exercise both execution paths (resident weights + streamed weights).
    out_resident = jax.block_until_ready(residual_stack(x, params))
    out_streaming = jax.block_until_ready(
        residual_stack(x, params, force_streaming=True))

    # Numerics bounded by the bf16 weights (and bf16 activations on v6e/v7x);
    # not f32-exact parity with the PyTorch reference.
    for out in (out_resident, out_streaming):
        assert out.shape == (N, F)
        max_err = jnp.max(jnp.abs(out - ref))
        assert jnp.allclose(out, ref, atol=1e-1, rtol=5e-2), \
            f"mismatch vs JAX reference, max abs err {max_err}"

    print("KERNEL_OK")
</pallas_src>

<mosaic_0001>
module attributes {stable_mosaic.version = 11 : i64} {
  func.func @_resident_kernel(%arg0: i32, %arg1: memref<64x128xf32, #tpu.memory_space<vmem>>, %arg2: memref<2x128x128xbf16, #tpu.memory_space<vmem>>, %arg3: memref<2x1x128xf32, #tpu.memory_space<vmem>>, %arg4: memref<2x128x128xbf16, #tpu.memory_space<vmem>>, %arg5: memref<2x1x128xf32, #tpu.memory_space<vmem>>, %arg6: memref<64x128xf32, #tpu.memory_space<vmem>>) attributes {dimension_semantics = [#tpu.dimension_semantics<parallel>], iteration_bounds = array<i64: 2>, scalar_prefetch = 0 : i64, scratch_operands = 0 : i64, tpu.core_type = #tpu.core_type<tc>, window_params = [{transform_indices = @transform_0, window_bounds = array<i64: 64, 128>}, {pipeline_mode = #tpu.pipeline_mode<synchronous>, transform_indices = @transform_1, window_bounds = array<i64: 2, 128, 128>}, {pipeline_mode = #tpu.pipeline_mode<synchronous>, transform_indices = @transform_2, window_bounds = array<i64: 2, 1, 128>}, {pipeline_mode = #tpu.pipeline_mode<synchronous>, transform_indices = @transform_3, window_bounds = array<i64: 2, 128, 128>}, {pipeline_mode = #tpu.pipeline_mode<synchronous>, transform_indices = @transform_4, window_bounds = array<i64: 2, 1, 128>}, {transform_indices = @transform_5, window_bounds = array<i64: 64, 128>}]} {
    %c0 = arith.constant 0 : index
    %c0_0 = arith.constant 0 : index
    %0 = vector.load %arg1[%c0, %c0_0] : memref<64x128xf32, #tpu.memory_space<vmem>>, vector<64x128xf32>
    %c0_1 = arith.constant 0 : index
    %c0_2 = arith.constant 0 : index
    %c0_3 = arith.constant 0 : index
    %1 = vector.load %arg2[%c0_1, %c0_2, %c0_3] : memref<2x128x128xbf16, #tpu.memory_space<vmem>>, vector<1x128x128xbf16>
    %2 = vector.shape_cast %1 : vector<1x128x128xbf16> to vector<128x128xbf16>
    %c0_4 = arith.constant 0 : index
    %c0_5 = arith.constant 0 : index
    %c0_6 = arith.constant 0 : index
    %3 = vector.load %arg3[%c0_4, %c0_5, %c0_6] : memref<2x1x128xf32, #tpu.memory_space<vmem>>, vector<1x1x128xf32>
    %4 = vector.shape_cast %3 : vector<1x1x128xf32> to vector<1x128xf32>
    %c0_7 = arith.constant 0 : index
    %c0_8 = arith.constant 0 : index
    %c0_9 = arith.constant 0 : index
    %5 = vector.load %arg4[%c0_7, %c0_8, %c0_9] : memref<2x128x128xbf16, #tpu.memory_space<vmem>>, vector<1x128x128xbf16>
    %6 = vector.shape_cast %5 : vector<1x128x128xbf16> to vector<128x128xbf16>
    %c0_10 = arith.constant 0 : index
    %c0_11 = arith.constant 0 : index
    %c0_12 = arith.constant 0 : index
    %7 = vector.load %arg5[%c0_10, %c0_11, %c0_12] : memref<2x1x128xf32, #tpu.memory_space<vmem>>, vector<1x1x128xf32>
    %8 = vector.shape_cast %7 : vector<1x1x128xf32> to vector<1x128xf32>
    %cst = arith.constant 5.000000e-01 : f32
    %9 = vector.broadcast %cst : f32 to vector<64x128xf32>
    %10 = arith.mulf %9, %0 : vector<64x128xf32>
    %cst_13 = arith.constant 5.000000e-01 : f32
    %11 = vector.broadcast %cst_13 : f32 to vector<64x128xf32>
    %12 = arith.mulf %11, %0 : vector<64x128xf32>
    %13 = math.tanh %12 : vector<64x128xf32>
    %cst_14 = arith.constant 1.000000e+00 : f32
    %14 = vector.broadcast %cst_14 : f32 to vector<64x128xf32>
    %15 = arith.addf %14, %13 : vector<64x128xf32>
    %16 = arith.mulf %10, %15 : vector<64x128xf32>
    %17 = arith.truncf %16 : vector<64x128xf32> to vector<64x128xbf16>
    %cst_15 = arith.constant dense<0.000000e+00> : vector<64x128xf32>
    %18 = tpu.matmul %17, %2, %cst_15 {dimension_numbers = #tpu.dot_dimension_numbers<[1], [0], [0], [1], [0, 0, 1, 1], [], []>} : vector<64x128xbf16>, vector<128x128xbf16>, vector<64x128xf32> -> vector<64x128xf32>
    %19 = vector.broadcast %4 : vector<1x128xf32> to vector<64x128xf32>
    %20 = arith.addf %18, %19 : vector<64x128xf32>
    %cst_16 = arith.constant 5.000000e-01 : f32
    %21 = vector.broadcast %cst_16 : f32 to vector<64x128xf32>
    %22 = arith.mulf %21, %20 : vector<64x128xf32>
    %cst_17 = arith.constant 5.000000e-01 : f32
    %23 = vector.broadcast %cst_17 : f32 to vector<64x128xf32>
    %24 = arith.mulf %23, %20 : vector<64x128xf32>
    %25 = math.tanh %24 : vector<64x128xf32>
    %cst_18 = arith.constant 1.000000e+00 : f32
    %26 = vector.broadcast %cst_18 : f32 to vector<64x128xf32>
    %27 = arith.addf %26, %25 : vector<64x128xf32>
    %28 = arith.mulf %22, %27 : vector<64x128xf32>
    %29 = arith.truncf %28 : vector<64x128xf32> to vector<64x128xbf16>
    %cst_19 = arith.constant dense<0.000000e+00> : vector<64x128xf32>
    %30 = tpu.matmul %29, %6, %cst_19 {dimension_numbers = #tpu.dot_dimension_numbers<[1], [0], [0], [1], [0, 0, 1, 1], [], []>} : vector<64x128xbf16>, vector<128x128xbf16>, vector<64x128xf32> -> vector<64x128xf32>
    %31 = vector.broadcast %8 : vector<1x128xf32> to vector<64x128xf32>
    %32 = arith.addf %30, %31 : vector<64x128xf32>
    %33 = arith.addf %0, %32 : vector<64x128xf32>
    %c1 = arith.constant 1 : index
    %c0_20 = arith.constant 0 : index
    %c0_21 = arith.constant 0 : index
    %34 = vector.load %arg2[%c1, %c0_20, %c0_21] : memref<2x128x128xbf16, #tpu.memory_space<vmem>>, vector<1x128x128xbf16>
    %35 = vector.shape_cast %34 : vector<1x128x128xbf16> to vector<128x128xbf16>
    %c1_22 = arith.constant 1 : index
    %c0_23 = arith.constant 0 : index
    %c0_24 = arith.constant 0 : index
    %36 = vector.load %arg3[%c1_22, %c0_23, %c0_24] : memref<2x1x128xf32, #tpu.memory_space<vmem>>, vector<1x1x128xf32>
    %37 = vector.shape_cast %36 : vector<1x1x128xf32> to vector<1x128xf32>
    %c1_25 = arith.constant 1 : index
    %c0_26 = arith.constant 0 : index
    %c0_27 = arith.constant 0 : index
    %38 = vector.load %arg4[%c1_25, %c0_26, %c0_27] : memref<2x128x128xbf16, #tpu.memory_space<vmem>>, vector<1x128x128xbf16>
    %39 = vector.shape_cast %38 : vector<1x128x128xbf16> to vector<128x128xbf16>
    %c1_28 = arith.constant 1 : index
    %c0_29 = arith.constant 0 : index
    %c0_30 = arith.constant 0 : index
    %40 = vector.load %arg5[%c1_28, %c0_29, %c0_30] : memref<2x1x128xf32, #tpu.memory_space<vmem>>, vector<1x1x128xf32>
    %41 = vector.shape_cast %40 : vector<1x1x128xf32> to vector<1x128xf32>
    %cst_31 = arith.constant 5.000000e-01 : f32
    %42 = vector.broadcast %cst_31 : f32 to vector<64x128xf32>
    %43 = arith.mulf %42, %33 : vector<64x128xf32>
    %cst_32 = arith.constant 5.000000e-01 : f32
    %44 = vector.broadcast %cst_32 : f32 to vector<64x128xf32>
    %45 = arith.mulf %44, %33 : vector<64x128xf32>
    %46 = math.tanh %45 : vector<64x128xf32>
    %cst_33 = arith.constant 1.000000e+00 : f32
    %47 = vector.broadcast %cst_33 : f32 to vector<64x128xf32>
    %48 = arith.addf %47, %46 : vector<64x128xf32>
    %49 = arith.mulf %43, %48 : vector<64x128xf32>
    %50 = arith.truncf %49 : vector<64x128xf32> to vector<64x128xbf16>
    %cst_34 = arith.constant dense<0.000000e+00> : vector<64x128xf32>
    %51 = tpu.matmul %50, %35, %cst_34 {dimension_numbers = #tpu.dot_dimension_numbers<[1], [0], [0], [1], [0, 0, 1, 1], [], []>} : vector<64x128xbf16>, vector<128x128xbf16>, vector<64x128xf32> -> vector<64x128xf32>
    %52 = vector.broadcast %37 : vector<1x128xf32> to vector<64x128xf32>
    %53 = arith.addf %51, %52 : vector<64x128xf32>
    %cst_35 = arith.constant 5.000000e-01 : f32
    %54 = vector.broadcast %cst_35 : f32 to vector<64x128xf32>
    %55 = arith.mulf %54, %53 : vector<64x128xf32>
    %cst_36 = arith.constant 5.000000e-01 : f32
    %56 = vector.broadcast %cst_36 : f32 to vector<64x128xf32>
    %57 = arith.mulf %56, %53 : vector<64x128xf32>
    %58 = math.tanh %57 : vector<64x128xf32>
    %cst_37 = arith.constant 1.000000e+00 : f32
    %59 = vector.broadcast %cst_37 : f32 to vector<64x128xf32>
    %60 = arith.addf %59, %58 : vector<64x128xf32>
    %61 = arith.mulf %55, %60 : vector<64x128xf32>
    %62 = arith.truncf %61 : vector<64x128xf32> to vector<64x128xbf16>
    %cst_38 = arith.constant dense<0.000000e+00> : vector<64x128xf32>
    %63 = tpu.matmul %62, %39, %cst_38 {dimension_numbers = #tpu.dot_dimension_numbers<[1], [0], [0], [1], [0, 0, 1, 1], [], []>} : vector<64x128xbf16>, vector<128x128xbf16>, vector<64x128xf32> -> vector<64x128xf32>
    %64 = vector.broadcast %41 : vector<1x128xf32> to vector<64x128xf32>
    %65 = arith.addf %63, %64 : vector<64x128xf32>
    %66 = arith.addf %33, %65 : vector<64x128xf32>
    %c0_39 = arith.constant 0 : index
    %c0_40 = arith.constant 0 : index
    %67 = vector.load %arg6[%c0_39, %c0_40] : memref<64x128xf32, #tpu.memory_space<vmem>>, vector<64x128xf32>
    tpu.vector_store %arg6[%c0_39, %c0_40], %66 {strides = array<i32>} : memref<64x128xf32, #tpu.memory_space<vmem>>, vector<64x128xf32>,
    return
  }
  func.func @transform_0(%arg0: i32) -> (i32, i32) {
    %c0_i32 = arith.constant 0 : i32
    %c0_i32_0 = arith.constant 0 : i32
    return %arg0, %c0_i32 : i32, i32
  }
  func.func @transform_1(%arg0: i32) -> (i32, i32, i32) {
    %c0_i32 = arith.constant 0 : i32
    %c0_i32_0 = arith.constant 0 : i32
    %c0_i32_1 = arith.constant 0 : i32
    %c0_i32_2 = arith.constant 0 : i32
    return %c0_i32, %c0_i32_0, %c0_i32_1 : i32, i32, i32
  }
  func.func @transform_2(%arg0: i32) -> (i32, i32, i32) {
    %c0_i32 = arith.constant 0 : i32
    %c0_i32_0 = arith.constant 0 : i32
    %c0_i32_1 = arith.constant 0 : i32
    %c0_i32_2 = arith.constant 0 : i32
    return %c0_i32, %c0_i32_0, %c0_i32_1 : i32, i32, i32
  }
  func.func @transform_3(%arg0: i32) -> (i32, i32, i32) {
    %c0_i32 = arith.constant 0 : i32
    %c0_i32_0 = arith.constant 0 : i32
    %c0_i32_1 = arith.constant 0 : i32
    %c0_i32_2 = arith.constant 0 : i32
    return %c0_i32, %c0_i32_0, %c0_i32_1 : i32, i32, i32
  }
  func.func @transform_4(%arg0: i32) -> (i32, i32, i32) {
    %c0_i32 = arith.constant 0 : i32
    %c0_i32_0 = arith.constant 0 : i32
    %c0_i32_1 = arith.constant 0 : i32
    %c0_i32_2 = arith.constant 0 : i32
    return %c0_i32, %c0_i32_0, %c0_i32_1 : i32, i32, i32
  }
  func.func @transform_5(%arg0: i32) -> (i32, i32) {
    %c0_i32 = arith.constant 0 : i32
    %c0_i32_0 = arith.constant 0 : i32
    return %arg0, %c0_i32 : i32, i32
  }
}

</mosaic_0001>

<bundles_post_ra>
// kernel: tpu_custom_call.1
= control target key start
LH: loop header
LB: loop body
LE: loop exit
PB: predicated region body
PF: predicated region fallthrough
CT: control target
= control target key end

     0   :  { %10 = vsyncpa [#allocation3], 0  ;;  %s1811_s0 = inlined_call_operand.hbm [shape: f32[128,128], index: 0, kind: input, shape index: {}]   ;;  %s1812_s1 = inlined_call_operand.hbm [shape: bf16[2,128,128], index: 1, kind: input, shape index: {}]   ;;  %s1813_s2 = inlined_call_operand.hbm [shape: f32[2,1,128], index: 2, kind: input, shape index: {}]   ;;  %s1814_s3 = inlined_call_operand.hbm [shape: bf16[2,128,128], index: 3, kind: input, shape index: {}]   ;;  %s1815_s4 = inlined_call_operand.vmem [shape: f32[2,1,128], index: 4, kind: input, shape index: {}]   ;;  %s1816_s5 = inlined_call_operand.hbm [shape: f32[128,128], index: 5, kind: output, shape index: {}]  }
   0x1   :  { %12 = vsyncpa [#allocation3 + $0x1], 0 }
   0x2   :  { %13 = vsyncpa [#allocation6], 0 }
   0x3   :  { %14 = vsyncpa [#allocation9], 0 }
   0x4   :  { %15 = vsyncpa [#allocation4], 0 }
   0x5   :  { %17 = vsyncpa [#allocation4 + $0x1], 0  ;;  %s1556_s18 = smov 0   ;;  %s1558_s19 = smov 0  }
   0x6   :  { %s1560_s20 = smov 0   ;;  %s1562_s21 = smov 0  }
   0x7 LB: > { %s1577_s22 = sadd.s32 4294967295, %s1513_s21   ;;  %s983_s23 = sadd.s32 4294967294, %s1513_s21   ;;  %s1513_s21 = sphi %s1562_s21, %s1827_s21   ;;  %s1509_s20 = sphi %s1560_s20, %s1826_s20   ;;  %s1505_s19 = sphi %s1558_s19, %s1825_s19   ;;  %s1501_s18 = sphi %s1556_s18, %s1824_s18  }
   0x8   : > { %p43_p0 = scmp.ne.s32.totalorder %s1505_s19, %s1501_s18  ;;  %p44_p1 = scmp.eq.s32.totalorder %s1577_s22, 0 }
   0x9   : > { %p151_p2 = scmp.eq.s32.totalorder %s1577_s22, 1  ;;  %p157_p3 = scmp.eq.s32.totalorder %s983_s23, 1 }
   0xa   : > { %p1586_p4 = por %p44_p1, %p43_p0  ;;  %p984_p5 = scmp.ge.s32.totalorder %s1513_s21, 1 }
   0xb   : > { %p1591_p6 = por %p157_p3, %p43_p0  ;;  %p164_p7 = scmp.lt.s32.totalorder %s1513_s21, 3 }
   0xc   : > { %s175_s28 = sshll.u32 %s1812_s1, 4  ;;  %s1515_s30 = smov [#allocation5]   ;;  %s176_s28 = int_to_ptr.hbm [resolvable:$true] %s175_s28 }
   0xd   : > { %p1599_p8 = pnand %p984_p5, %p164_p7  ;;  %s177_s6 = sshll.u32 %s1515_s30, 4  ;;  %s178_s6 = int_to_ptr.vmem [resolvable:$true] %s177_s6 }
   0xe   : > { %s189_s10 = sshll.u32 %s1813_s2, 4  ;;  %s1516_s11 = smov 64   ;;  %s190_s10 = int_to_ptr.hbm [resolvable:$true] %s189_s10 }
   0xf   : > { %p1182_p9 = pneg %p1599_p8  ;;  %s1517_s12 = smov 4  }
  0x10   : > { %s1518_s13 = smov [#allocation7]   ;;  %s1519_s15 = smov 16  }
  0x11   : > { %p1607_p10 = pnand %p1182_p9, %p44_p1  ;;  %s191_s14 = sshll.u32 %s1518_s13, 4  ;;  %s192_s14 = int_to_ptr.vmem [resolvable:$true] %s191_s14 }
  0x12   : > { %s1520_s16 = smov 1   ;;  %s203_s26 = sshll.u32 %s1814_s3, 4  ;;  %s204_s26 = int_to_ptr.hbm [resolvable:$true] %s203_s26 }
  0x13   : > { %1185 = dma.hbm_to_vmem [thread:$0]  (!%p1607_p10), %s176_s28, 2048, %s178_s6, [#allocation6], %s1516_s11, %s1516_s11, %s1517_s12  }
  0x14   : > { %1188 = dma.hbm_to_vmem [thread:$0]  (!%p1607_p10), %s190_s10, 32, %s192_s14, [#allocation6], %s1519_s15, %s1519_s15, %s1520_s16  }
  0x15   : > { %s1521_s27 = smov [#allocation8]   ;;  %s1625_s30 = sadd.s32 1, %s1513_s21  }
  0x16   : > { %s205_s28 = sshll.u32 %s1521_s27, 4  ;;  %s27_s6 = ssub.s32 %s1513_s21, %s1625_s30  ;;  %s206_s28 = int_to_ptr.vmem [resolvable:$true] %s205_s28 }
  0x17   : > { %1191 = dma.hbm_to_vmem [thread:$0]  (!%p1607_p10), %s204_s26, 2048, %s206_s28, [#allocation9], %s1516_s11, %s1516_s11, %s1517_s12  }
  0x18   : > { %s30_s8 = sadd.s32 1, %s1509_s20  ;;  %p28_p12 = scmp.eq.s32.totalorder %s27_s6, 0 }
  0x19   : > { %p37_p13 = scmp.ne.s32.totalorder %s1509_s20, %s1505_s19  ;;  %p38_p0 = scmp.eq.s32.totalorder %s1513_s21, 0 }
  0x1a   : > { %p1203_p3 = scmp.lt.s32.totalorder %s1513_s21, 2  ;;  %s222_s7 = sand.u32 1, %s1509_s20  }
  0x1b   : > { %s1635_s9 = scalar_select %p28_p12, %s1509_s20, %s30_s8  }
  0x1c   : > { %p39_p5 = por %p38_p0, %p37_p13  ;;  %p1639_p7 = por %p151_p2, %p37_p13 }
  0x1d   : > { %s1132_s11 = sshll.u32 %s1513_s21, 6  ;;  %s989_s12 = sshll.u32 %s222_s7, 6 }
  0x1e   : > { %s231_s15 = scalar_lea.hbm %s1811_s0, %s1132_s11  ;;  %s226_s17 = scalar_lea.vmem [#allocation2], %s989_s12 }
  0x1f   : > { %s232_s16 = sshll.u32 %s231_s15, 4  ;;  %s234_s23 = sshll.u32 %s226_s17, 4  ;;  %s233_s16 = int_to_ptr.hbm [resolvable:$true] %s232_s16  ;;  %s235_s23 = int_to_ptr.vmem [resolvable:$true] %s234_s23 }
  0x20   : > { %p1650_p9 = pnand %p1203_p3, %p39_p5  ;;  %s223_s27 = scalar_lea.sflag [#allocation3], %s222_s7 }
  0x21   : > { %s1409_s28 = sshra.s32 %s233_s16, 4  ;;  %s1416_s12 = scalar_lea.hbm %s1811_s0, 128  ;;  %s1410_s28 = int_to_ptr.hbm [resolvable:$true] %s1409_s28 }
  0x22   : > { %s1411_s6 = scalar_lea.hbm %s1410_s28, 64  ;;  %p1413_p10 = pneg %p1650_p9 }
  0x23   : > { %p1412_p2 = scmp.ne.s32.totalorder %s1410_s28, %s1411_s6  ;;  %p1417_p0 = scmp.lt.s32.totalorder %s1410_s28, %s1811_s0 }
  0x24   : > { %p1418_p3 = scmp.lt.s32.totalorder %s1416_s12, %s1411_s6 }
  0x25   : > { %p1414_p12 = pnand %p1413_p10, %p1412_p2 }
  0x26   : > { %p1419_p5 = por %p1418_p3, %p1417_p0 }
  0x27   : > { %p1415_p13 = pneg %p1414_p12 }
  0x29   : > { %p1420_p11 = pnand %p1419_p5, %p1415_p13 }
  0x2b   : > { %1423 = shalt.err (!%p1420_p11)
}
  0x2c   : > { %s1522_s7 = smov 128   ;;  %s1523_s15 = smov 8  }
  0x2d   : > { %1195 = dma.hbm_to_vmem [thread:$0]  (!%p1650_p9), %s233_s16, 1024, %s235_s23, %s223_s27, %s1522_s7, %s1522_s7, %s1523_s15  }
  0x2e   : > { %246 = sbr.rel (%p1599_p8) target bundleno = 745 (0x2e9), region = 40  ;;  %s1667_s17 = sand.u32 (!%p1599_p8), 1, %s1505_s19  }
  0x2f   : > { %s993_s28 = sshll.u32 (!%p1599_p8), %s1667_s17, 6  ;;  %s249_s6 = scalar_lea.sflag (!%p1599_p8), [#allocation3], %s1667_s17 }
  0x30   : > { %s1673_s8 = scalar_lea.vmem (!%p1599_p8), [#allocation2], %s993_s28 }
  0x33   : > { %1484 = dma.done.wait (%p1586_p4), %s249_s6, 1024  }
  0x34   : > { %1486 = vsyncadd (%p1586_p4), %s249_s6, 4294966272 }
  0x35   : > { %1488 = dma.done.wait (%p44_p1), [#allocation6], 2080  }
  0x36   : > { %1490 = vsyncadd (%p44_p1), [#allocation6], 4294965216 }
  0x37   : > { %1492 = dma.done.wait (%p44_p1), [#allocation9], 2048  }
  0x38   : > { %1494 = vsyncadd (%p44_p1), [#allocation9], 4294965248  ;;  %v1140_v0 = vld [vmem:[#allocation5 + $0x38] sm:$0xff]  ;;  %v1139_v1 = vld [vmem:[#allocation5 + $0x30] sm:$0xff]  ;;  %s1760_s26 = scalar_lea.vmem [#allocation10], %s993_s28  ;;  %s1165_s27 = sshll.u32 %s1577_s22, 6 }
  0x39   : > { %426 = vmatpush.bf16.msra.mxu0 %v1140_v0  ;;  %v1688_v2 = vld [vmem:[%s1673_s8] sm:$0xff]  ;;  %v1691_v3 = vld [vmem:[%s1673_s8 + $0x8] sm:$0xff]  ;;  %v1136_v8 = vld [vmem:[#allocation5 + $0x18] sm:$0xff]  ;;  %s877_s13 = scalar_lea.hbm %s1816_s5, %s1165_s27  ;;  %s878_s14 = sshll.u32 %s1760_s26, 4  ;;  %s879_s14 = int_to_ptr.vmem [resolvable:$true] %s878_s14 }
  0x3a   : > { %v1138_v4 = vld [vmem:[#allocation5 + $0x28] sm:$0xff]  ;;  %v339_v5 = vmul.f32 0.5, %v1688_v2  ;;  %v340_v6 = vmul.f32 0.5, %v1691_v3  ;;  %v1137_v7 = vld [vmem:[#allocation5 + $0x20] sm:$0xff]  ;;  %v1135_v11 = vld [vmem:[#allocation5 + $0x10] sm:$0xff]  ;;  %s880_s7 = sshll.u32 %s877_s13, 4  ;;  %s881_s7 = int_to_ptr.hbm [resolvable:$true] %s880_s7 }
  0x3b   : > { %v1696_v12 = vld [vmem:[%s1673_s8 + $0x10] sm:$0xff]  ;;  %v1699_v15 = vld [vmem:[%s1673_s8 + $0x18] sm:$0xff]  ;;  %v1134_v16 = vld [vmem:[#allocation5 + $0x8] sm:$0xff]  ;;  %s866_s15 = scalar_lea.sflag [#allocation4], %s1667_s17  ;;  %s1453_s28 = sshra.s32 %s881_s7, 4  ;;  %s1454_s28 = int_to_ptr.hbm [resolvable:$true] %s1453_s28 }
  0x3c   : > { %1255 = vtanh.f32 %v339_v5  ;;  %v341_v17 = vmul.f32 0.5, %v1696_v12  ;;  %v342_v18 = vmul.f32 0.5, %v1699_v15  ;;  %v1133_v21 = vld [vmem:[#allocation5] sm:$0xff]  ;;  %v1707_v28 = vld [vmem:[%s1673_s8 + $0x28] sm:$0xff]  ;;  %v1147_v37 = vld [vmem:[#allocation8 + $0x30] sm:$0xff]  ;;  %s1455_s22 = scalar_lea.hbm %s1454_s28, 64  ;;  %p1460_p11 = scmp.lt.s32.totalorder %s1454_s28, %s1816_s5 }
  0x3d   : > { %427 = vmatpush.bf16.msra.mxu0 %v1139_v1  ;;  %1257 = vtanh.f32 %v340_v6  ;;  %v1704_v25 = vld [vmem:[%s1673_s8 + $0x20] sm:$0xff]  ;;  %v344_v30 = vmul.f32 0.5, %v1707_v28  ;;  %v1712_v38 = vld [vmem:[%s1673_s8 + $0x30] sm:$0xff]  ;;  %v1715_v41 = vld [vmem:[%s1673_s8 + $0x38] sm:$0xff]  ;;  %p1456_p1 = scmp.ne.s32.totalorder %s1454_s28, %s1455_s22  ;;  %s1459_s24 = scalar_lea.hbm %s1816_s5, 128 }
  0x3e   : > { %1259 = vtanh.f32 %v341_v17  ;;  %v343_v29 = vmul.f32 0.5, %v1704_v25  ;;  %v1148_v35 = vld [vmem:[#allocation8 + $0x38] sm:$0xff]  ;;  %v345_v42 = vmul.f32 0.5, %v1712_v38  ;;  %v346_v43 = vmul.f32 0.5, %v1715_v41  ;;  %v1146_v54 = vld [vmem:[#allocation8 + $0x28] sm:$0xff]  ;;  %v1145_v55 = vld [vmem:[#allocation8 + $0x20] sm:$0xff]  ;;  %p1461_p9 = scmp.lt.s32.totalorder %s1459_s24, %s1455_s22 }
  0x3f   : > { %1261 = vtanh.f32 %v342_v18  ;;  %542 = vmatpush.bf16.msra.mxu1 %v1148_v35  ;;  %v1144_v56 = vld [vmem:[#allocation8 + $0x18] sm:$0xff]  ;;  %v1143_v57 = vld [vmem:[#allocation8 + $0x10] sm:$0xff]  ;;  %v1142_v58 = vld [vmem:[#allocation8 + $0x8] sm:$0xff]  ;;  %p1457_p4 = pnand %p1456_p1, %p1639_p7 }
  0x40   : > { %1263 = vtanh.f32 %v343_v29  ;;  %v1141_v59 = vld [vmem:[#allocation8] sm:$0xff]  ;;  %v1251_v60 = vld [vmem:[#allocation7] ss:$0 sm:$0xff]  ;;  %p1462_p2 = por %p1461_p9, %p1460_p11 }
  0x41   : > { %428 = vmatpush.bf16.msra.mxu0 %v1138_v4  ;;  %1265 = vtanh.f32 %v344_v30  ;;  %p1458_p8 = pneg %p1457_p4 }
  0x42   : > { %v1256_v9 = vpop.eup %1255  ;;  %1267 = vtanh.f32 %v345_v42 }
  0x43   : > { %v1258_v10 = vpop.eup %1257  ;;  %v355_v13 = vadd.f32 1.0, %v1256_v9  ;;  %543 = vmatpush.bf16.msra.mxu1 %v1147_v37  ;;  %1269 = vtanh.f32 %v346_v43  ;;  %p1463_p10 = pnand %p1462_p2, %p1458_p8 }
  0x44   : > { %v356_v14 = vadd.f32 1.0, %v1258_v10  ;;  %v1260_v23 = vpop.eup %1259 }
  0x45   : > { %429 = vmatpush.bf16.msra.mxu0 %v1137_v7  ;;  %v363_v19 = vmul.f32 %v355_v13, %v339_v5  ;;  %v1262_v24 = vpop.eup %1261  ;;  %v357_v26 = vadd.f32 1.0, %v1260_v23 }
  0x46   : > { %v364_v20 = vmul.f32 %v356_v14, %v340_v6  ;;  %v358_v27 = vadd.f32 1.0, %v1262_v24  ;;  %v1264_v34 = vpop.eup %1263 }
  0x47   : > { %v365_v31 = vmul.f32 %v357_v26, %v341_v17  ;;  %v1266_v36 = vpop.eup %1265  ;;  %v359_v39 = vadd.f32 1.0, %v1264_v34  ;;  %544 = vmatpush.bf16.msra.mxu1 %v1146_v54  ;;  %v1156_v34 = vld [vmem:[#allocation5 + $0x78] sm:$0xff] }
  0x48   : > { %v371_v22 = vpack.c.bf16 %v364_v20, %v363_v19  ;;  %v366_v32 = vmul.f32 %v358_v27, %v342_v18  ;;  %v360_v40 = vadd.f32 1.0, %v1266_v36  ;;  %v1268_v47 = vpop.eup %1267  ;;  %704 = vmatpush.bf16.msra.mxu2 %v1156_v34 }
  0x49   : > { %430 = vmatpush.bf16.msra.mxu0 %v1136_v8  ;;  %v367_v44 = vmul.f32 %v359_v39, %v343_v29  ;;  %v1270_v48 = vpop.eup %1269  ;;  %v361_v49 = vadd.f32 1.0, %v1268_v47 }
  0x4a   : > { %v372_v33 = vpack.c.bf16 %v366_v32, %v365_v31  ;;  %v368_v45 = vmul.f32 %v360_v40, %v344_v30  ;;  %v362_v50 = vadd.f32 1.0, %v1270_v48 }
  0x4b   : > { %v369_v51 = vmul.f32 %v361_v49, %v345_v42  ;;  %545 = vmatpush.bf16.msra.mxu1 %v1145_v55 }
  0x4c   : > { %v373_v46 = vpack.c.bf16 %v368_v45, %v367_v44  ;;  %v370_v52 = vmul.f32 %v362_v50, %v346_v43 }
  0x4d   : > { %431 = vmatpush.bf16.msra.mxu0 %v1135_v11 }
  0x4e   : > { %v374_v53 = vpack.c.bf16 %v370_v52, %v369_v51 }
  0x4f   : > { %546 = vmatpush.bf16.msra.mxu1 %v1144_v56 }
  0x51   : > { %432 = vmatpush.bf16.msra.mxu0 %v1134_v16 }
  0x53   : > { %547 = vmatpush.bf16.msra.mxu1 %v1143_v57 }
  0x55   : > { %433 = vmatpush.bf16.msra.mxu0 %v1133_v21 }
  0x57   : > { %548 = vmatpush.bf16.msra.mxu1 %v1142_v58  ;;  %v1155_v58 = vld [vmem:[#allocation5 + $0x70] sm:$0xff] }
  0x58   : > { %434 = vmatmul.bf16.vlgmr.msra.gmra.mxu0 %v371_v22  ;;  %705 = vmatpush.bf16.msra.mxu2 %v1155_v58 }
  0x5b   : > { %549 = vmatpush.bf16.msra.mxu1 %v1141_v59  ;;  %v1154_v59 = vld [vmem:[#allocation5 + $0x68] sm:$0xff] }
  0x5c   : > { %706 = vmatpush.bf16.msra.mxu2 %v1154_v59 }
  0x68   : > { %439 = vmatmul.bf16.gmra.mxu0 %v372_v33 }
  0x78   : > { %444 = vmatmul.bf16.gmra.mxu0 %v373_v46 }
  0x88   : > { %449 = vmatmul.bf16.gmra.mxu0 %v374_v53 }
  0xd5   : > { %v435_v61 = vpop.f32.mrf.mxu0 }
  0xd6   : > { %v436_v62 = vadd.f32 %v1251_v60, %v435_v61  ;;  %v1153_v61 = vld [vmem:[#allocation5 + $0x60] sm:$0xff] }
  0xd7   : > { %707 = vmatpush.bf16.msra.mxu2 %v1153_v61 }
  0xd8   : > { %v455_v63 = vmul.f32 0.5, %v436_v62  ;;  %v1152_v62 = vld [vmem:[#allocation5 + $0x58] sm:$0xff] }
  0xda   : > { %1271 = vtanh.f32 %v455_v63 }
  0xdb   : > { %708 = vmatpush.bf16.msra.mxu2 %v1152_v62 }
  0xdd   : > { %v437_v0 = vpop.f32.mrf.mxu0 }
  0xde   : > { %v438_v1 = vadd.f32 %v1251_v60, %v437_v0  ;;  %v1149_v0 = vld [vmem:[#allocation5 + $0x40] sm:$0xff] }
  0xe0   : > { %v456_v4 = vmul.f32 0.5, %v438_v1  ;;  %v1272_v5 = vpop.eup %1271  ;;  %v1252_v1 = vld [vmem:[%s1815_s4] ss:$0 sm:$0xff] }
  0xe1   : > { %v471_v8 = vadd.f32 1.0, %v1272_v5 }
  0xe2   : > { %1273 = vtanh.f32 %v456_v4 }
  0xe3   : > { %v479_v13 = vmul.f32 %v471_v8, %v455_v63  ;;  %v1150_v63 = vld [vmem:[#allocation5 + $0x48] sm:$0xff] }
  0xe5   : > { %v440_v6 = vpop.f32.mrf.mxu0 }
  0xe6   : > { %v441_v7 = vadd.f32 %v1251_v60, %v440_v6 }
  0xe8   : > { %v1274_v9 = vpop.eup %1273  ;;  %v457_v11 = vmul.f32 0.5, %v441_v7 }
  0xe9   : > { %v472_v10 = vadd.f32 1.0, %v1274_v9 }
  0xea   : > { %1275 = vtanh.f32 %v457_v11 }
  0xeb   : > { %v480_v14 = vmul.f32 %v472_v10, %v456_v4 }
  0xed   : > { %v442_v16 = vpop.f32.mrf.mxu0  ;;  %v487_v17 = vpack.c.bf16 %v480_v14, %v479_v13 }
  0xee   : > { %v443_v18 = vadd.f32 %v1251_v60, %v442_v16 }
  0xef   : > { %550 = vmatmul.bf16.vlgmr.msra.gmra.mxu1 %v487_v17 }
  0xf0   : > { %v458_v19 = vmul.f32 0.5, %v443_v18  ;;  %v1276_v20 = vpop.eup %1275 }
  0xf1   : > { %v473_v23 = vadd.f32 1.0, %v1276_v20 }
  0xf2   : > { %1277 = vtanh.f32 %v458_v19 }
  0xf3   : > { %v481_v29 = vmul.f32 %v473_v23, %v457_v11 }
  0xf5   : > { %v445_v21 = vpop.f32.mrf.mxu0 }
  0xf6   : > { %v446_v22 = vadd.f32 %v1251_v60, %v445_v21 }
  0xf8   : > { %v1278_v24 = vpop.eup %1277  ;;  %v459_v27 = vmul.f32 0.5, %v446_v22 }
  0xf9   : > { %v474_v26 = vadd.f32 1.0, %v1278_v24 }
  0xfa   : > { %1279 = vtanh.f32 %v459_v27 }
  0xfb   : > { %v482_v30 = vmul.f32 %v474_v26, %v458_v19 }
  0xfd   : > { %v447_v31 = vpop.f32.mrf.mxu0  ;;  %v488_v32 = vpack.c.bf16 %v482_v30, %v481_v29 }
  0xfe   : > { %v448_v33 = vadd.f32 %v1251_v60, %v447_v31 }
  0xff   : > { %555 = vmatmul.bf16.gmra.mxu1 %v488_v32 }
 0x100   : > { %v460_v35 = vmul.f32 0.5, %v448_v33  ;;  %v1280_v36 = vpop.eup %1279 }
 0x101   : > { %v475_v40 = vadd.f32 1.0, %v1280_v36 }
 0x102   : > { %1281 = vtanh.f32 %v460_v35 }
 0x103   : > { %v483_v45 = vmul.f32 %v475_v40, %v459_v27 }
 0x105   : > { %v450_v37 = vpop.f32.mrf.mxu0 }
 0x106   : > { %v451_v39 = vadd.f32 %v1251_v60, %v450_v37 }
 0x108   : > { %v1282_v42 = vpop.eup %1281  ;;  %v461_v44 = vmul.f32 0.5, %v451_v39 }
 0x109   : > { %v476_v43 = vadd.f32 1.0, %v1282_v42 }
 0x10a   : > { %1283 = vtanh.f32 %v461_v44 }
 0x10b   : > { %v484_v46 = vmul.f32 %v476_v43, %v460_v35  ;;  %v1164_v43 = vld [vmem:[#allocation8 + $0x78] sm:$0xff] }
 0x10c   : > { %820 = vmatpush.bf16.msra.mxu3 %v1164_v43 }
 0x10d   : > { %v452_v47 = vpop.f32.mrf.mxu0  ;;  %v489_v48 = vpack.c.bf16 %v484_v46, %v483_v45 }
 0x10e   : > { %v453_v49 = vadd.f32 %v1251_v60, %v452_v47  ;;  %v1151_v60 = vld [vmem:[#allocation5 + $0x50] sm:$0xff] }
 0x10f   : > { %560 = vmatmul.bf16.gmra.mxu1 %v489_v48  ;;  %709 = vmatpush.bf16.msra.mxu2 %v1151_v60 }
 0x110   : > { %v462_v50 = vmul.f32 0.5, %v453_v49  ;;  %v1284_v51 = vpop.eup %1283 }
 0x111   : > { %v477_v52 = vadd.f32 1.0, %v1284_v51 }
 0x112   : > { %1285 = vtanh.f32 %v462_v50 }
 0x113   : > { %v485_v55 = vmul.f32 %v477_v52, %v461_v44  ;;  %710 = vmatpush.bf16.msra.mxu2 %v1150_v63 }
 0x117   : > { %711 = vmatpush.bf16.msra.mxu2 %v1149_v0 }
 0x118   : > { %v1286_v53 = vpop.eup %1285 }
 0x119   : > { %v478_v54 = vadd.f32 1.0, %v1286_v53 }
 0x11b   : > { %v486_v56 = vmul.f32 %v478_v54, %v462_v50 }
 0x11d   : > { %v490_v57 = vpack.c.bf16 %v486_v56, %v485_v55 }
 0x11f   : > { %565 = vmatmul.bf16.gmra.mxu1 %v490_v57 }
 0x16c   : > { %v551_v4 = vpop.f32.mrf.mxu1 }
 0x16d   : > { %v552_v5 = vadd.f32 %v1252_v1, %v551_v4  ;;  %v1162_v4 = vld [vmem:[#allocation8 + $0x68] sm:$0xff] }
 0x16f   : > { %v1723_v6 = vadd.f32 %v552_v5, %v1688_v2  ;;  %v1160_v5 = vld [vmem:[#allocation8 + $0x58] sm:$0xff] }
 0x171   : > { %v617_v7 = vmul.f32 0.5, %v1723_v6 }
 0x173   : > { %1287 = vtanh.f32 %v617_v7 }
 0x174   : > { %v553_v8 = vpop.f32.mrf.mxu1 }
 0x175   : > { %v554_v9 = vadd.f32 %v1252_v1, %v553_v8  ;;  %v1157_v8 = vld [vmem:[#allocation8 + $0x40] sm:$0xff] }
 0x177   : > { %v1727_v10 = vadd.f32 %v554_v9, %v1691_v3  ;;  %v1253_v9 = vld [vmem:[#allocation7 + $0x1] ss:$0 sm:$0xff] }
 0x179   : > { %v618_v11 = vmul.f32 0.5, %v1727_v10  ;;  %v1288_v14 = vpop.eup %1287 }
 0x17a   : > { %v633_v18 = vadd.f32 1.0, %v1288_v14 }
 0x17b   : > { %1289 = vtanh.f32 %v618_v11 }
 0x17c   : > { %v556_v13 = vpop.f32.mrf.mxu1  ;;  %v641_v22 = vmul.f32 %v633_v18, %v617_v7  ;;  %v1158_v7 = vld [vmem:[#allocation8 + $0x48] sm:$0xff] }
 0x17d   : > { %v557_v16 = vadd.f32 %v1252_v1, %v556_v13 }
 0x17f   : > { %v1731_v17 = vadd.f32 %v557_v16, %v1696_v12 }
 0x181   : > { %v1290_v2 = vpop.eup %1289  ;;  %v619_v20 = vmul.f32 0.5, %v1731_v17 }
 0x182   : > { %v634_v19 = vadd.f32 1.0, %v1290_v2 }
 0x183   : > { %1291 = vtanh.f32 %v619_v20 }
 0x184   : > { %v558_v21 = vpop.f32.mrf.mxu1  ;;  %v642_v23 = vmul.f32 %v634_v19, %v618_v11 }
 0x185   : > { %v559_v24 = vadd.f32 %v1252_v1, %v558_v21 }
 0x186   : > { %v649_v3 = vpack.c.bf16 %v642_v23, %v641_v22 }
 0x187   : > { %v1735_v26 = vadd.f32 %v559_v24, %v1699_v15 }
 0x188   : > { %712 = vmatmul.bf16.vlgmr.msra.gmra.mxu2 %v649_v3 }
 0x189   : > { %v620_v27 = vmul.f32 0.5, %v1735_v26  ;;  %v1292_v29 = vpop.eup %1291 }
 0x18a   : > { %v635_v32 = vadd.f32 1.0, %v1292_v29 }
 0x18b   : > { %1293 = vtanh.f32 %v620_v27 }
 0x18c   : > { %v561_v12 = vpop.f32.mrf.mxu1  ;;  %v643_v37 = vmul.f32 %v635_v32, %v619_v20 }
 0x18d   : > { %v562_v30 = vadd.f32 %v1252_v1, %v561_v12 }
 0x18f   : > { %v1739_v31 = vadd.f32 %v562_v30, %v1704_v25  ;;  %v1163_v25 = vld [vmem:[#allocation8 + $0x70] sm:$0xff] }
 0x190   : > { %821 = vmatpush.bf16.msra.mxu3 %v1163_v25 }
 0x191   : > { %v1294_v33 = vpop.eup %1293  ;;  %v621_v35 = vmul.f32 0.5, %v1739_v31 }
 0x192   : > { %v636_v34 = vadd.f32 1.0, %v1294_v33 }
 0x193   : > { %1295 = vtanh.f32 %v621_v35 }
 0x194   : > { %v563_v36 = vpop.f32.mrf.mxu1  ;;  %v644_v39 = vmul.f32 %v636_v34, %v620_v27  ;;  %822 = vmatpush.bf16.msra.mxu3 %v1162_v4 }
 0x195   : > { %v564_v15 = vadd.f32 %v1252_v1, %v563_v36 }
 0x196   : > { %v650_v40 = vpack.c.bf16 %v644_v39, %v643_v37 }
 0x197   : > { %v1743_v42 = vadd.f32 %v564_v15, %v1707_v28 }
 0x198   : > { %717 = vmatmul.bf16.gmra.mxu2 %v650_v40 }
 0x199   : > { %v622_v44 = vmul.f32 0.5, %v1743_v42  ;;  %v1296_v46 = vpop.eup %1295 }
 0x19a   : > { %v637_v49 = vadd.f32 1.0, %v1296_v46 }
 0x19b   : > { %1297 = vtanh.f32 %v622_v44 }
 0x19c   : > { %v566_v45 = vpop.f32.mrf.mxu1  ;;  %v645_v53 = vmul.f32 %v637_v49, %v621_v35 }
 0x19d   : > { %v567_v47 = vadd.f32 %v1252_v1, %v566_v45 }
 0x19f   : > { %v1747_v48 = vadd.f32 %v567_v47, %v1712_v38 }
 0x1a1   : > { %v1298_v50 = vpop.eup %1297  ;;  %v623_v28 = vmul.f32 0.5, %v1747_v48 }
 0x1a2   : > { %v638_v51 = vadd.f32 1.0, %v1298_v50 }
 0x1a3   : > { %1299 = vtanh.f32 %v623_v28 }
 0x1a4   : > { %v568_v52 = vpop.f32.mrf.mxu1  ;;  %v646_v54 = vmul.f32 %v638_v51, %v622_v44 }
 0x1a5   : > { %v569_v55 = vadd.f32 %v1252_v1, %v568_v52  ;;  %v1161_v1 = vld [vmem:[#allocation8 + $0x60] sm:$0xff] }
 0x1a6   : > { %v651_v56 = vpack.c.bf16 %v646_v54, %v645_v53  ;;  %823 = vmatpush.bf16.msra.mxu3 %v1161_v1 }
 0x1a7   : > { %v1751_v57 = vadd.f32 %v569_v55, %v1715_v41  ;;  %v1159_v41 = vld [vmem:[#allocation8 + $0x50] sm:$0xff] }
 0x1a8   : > { %722 = vmatmul.bf16.gmra.mxu2 %v651_v56 }
 0x1a9   : > { %v624_v58 = vmul.f32 0.5, %v1751_v57  ;;  %v1300_v38 = vpop.eup %1299 }
 0x1aa   : > { %v639_v59 = vadd.f32 1.0, %v1300_v38  ;;  %824 = vmatpush.bf16.msra.mxu3 %v1160_v5 }
 0x1ab   : > { %1301 = vtanh.f32 %v624_v58 }
 0x1ac   : > { %v647_v60 = vmul.f32 %v639_v59, %v623_v28 }
 0x1ae   : > { %825 = vmatpush.bf16.msra.mxu3 %v1159_v41  ;;  %v1254_v41 = vld [vmem:[%s1815_s4 + $0x1] ss:$0 sm:$0xff] }
 0x1b1   : > { %v1302_v61 = vpop.eup %1301 }
 0x1b2   : > { %v640_v62 = vadd.f32 1.0, %v1302_v61  ;;  %826 = vmatpush.bf16.msra.mxu3 %v1158_v7 }
 0x1b4   : > { %v648_v63 = vmul.f32 %v640_v62, %v624_v58 }
 0x1b6   : > { %v652_v0 = vpack.c.bf16 %v648_v63, %v647_v60  ;;  %827 = vmatpush.bf16.msra.mxu3 %v1157_v8 }
 0x1b8   : > { %727 = vmatmul.bf16.gmra.mxu2 %v652_v0 }
 0x20b   : > { %v713_v11 = vpop.f32.mrf.mxu2 }
 0x20c   : > { %v714_v13 = vadd.f32 %v1253_v9, %v713_v11 }
 0x20e   : > { %v733_v14 = vmul.f32 0.5, %v714_v13 }
 0x210   : > { %1303 = vtanh.f32 %v733_v14 }
 0x213   : > { %v715_v16 = vpop.f32.mrf.mxu2 }
 0x214   : > { %v716_v18 = vadd.f32 %v1253_v9, %v715_v16 }
 0x216   : > { %v734_v2 = vmul.f32 0.5, %v716_v18  ;;  %v1304_v19 = vpop.eup %1303 }
 0x217   : > { %v749_v22 = vadd.f32 1.0, %v1304_v19 }
 0x218   : > { %1305 = vtanh.f32 %v734_v2 }
 0x219   : > { %v757_v27 = vmul.f32 %v749_v22, %v733_v14 }
 0x21b   : > { %v718_v20 = vpop.f32.mrf.mxu2 }
 0x21c   : > { %v719_v21 = vadd.f32 %v1253_v9, %v718_v20 }
 0x21e   : > { %v1306_v23 = vpop.eup %1305  ;;  %v735_v3 = vmul.f32 0.5, %v719_v21 }
 0x21f   : > { %v750_v24 = vadd.f32 1.0, %v1306_v23 }
 0x220   : > { %1307 = vtanh.f32 %v735_v3 }
 0x221   : > { %v758_v12 = vmul.f32 %v750_v24, %v734_v2 }
 0x223   : > { %v720_v29 = vpop.f32.mrf.mxu2  ;;  %v765_v30 = vpack.c.bf16 %v758_v12, %v757_v27 }
 0x224   : > { %v721_v32 = vadd.f32 %v1253_v9, %v720_v29 }
 0x225   : > { %828 = vmatmul.bf16.vlgmr.msra.gmra.mxu3 %v765_v30 }
 0x226   : > { %v736_v33 = vmul.f32 0.5, %v721_v32  ;;  %v1308_v34 = vpop.eup %1307 }
 0x227   : > { %v751_v37 = vadd.f32 1.0, %v1308_v34 }
 0x228   : > { %1309 = vtanh.f32 %v736_v33 }
 0x229   : > { %v759_v43 = vmul.f32 %v751_v37, %v735_v3 }
 0x22b   : > { %v723_v35 = vpop.f32.mrf.mxu2 }
 0x22c   : > { %v724_v36 = vadd.f32 %v1253_v9, %v723_v35 }
 0x22e   : > { %v1310_v39 = vpop.eup %1309  ;;  %v737_v40 = vmul.f32 0.5, %v724_v36 }
 0x22f   : > { %v752_v15 = vadd.f32 1.0, %v1310_v39 }
 0x230   : > { %1311 = vtanh.f32 %v737_v40 }
 0x231   : > { %v760_v44 = vmul.f32 %v752_v15, %v736_v33 }
 0x233   : > { %v725_v25 = vpop.f32.mrf.mxu2  ;;  %v766_v45 = vpack.c.bf16 %v760_v44, %v759_v43 }
 0x234   : > { %v726_v46 = vadd.f32 %v1253_v9, %v725_v25 }
 0x235   : > { %833 = vmatmul.bf16.gmra.mxu3 %v766_v45 }
 0x236   : > { %v738_v47 = vmul.f32 0.5, %v726_v46  ;;  %v1312_v49 = vpop.eup %1311 }
 0x237   : > { %v753_v28 = vadd.f32 1.0, %v1312_v49 }
 0x238   : > { %1313 = vtanh.f32 %v738_v47 }
 0x239   : > { %v761_v55 = vmul.f32 %v753_v28, %v737_v40 }
 0x23b   : > { %v728_v50 = vpop.f32.mrf.mxu2 }
 0x23c   : > { %v729_v51 = vadd.f32 %v1253_v9, %v728_v50 }
 0x23e   : > { %v1314_v52 = vpop.eup %1313  ;;  %v739_v54 = vmul.f32 0.5, %v729_v51 }
 0x23f   : > { %v754_v53 = vadd.f32 1.0, %v1314_v52 }
 0x240   : > { %1315 = vtanh.f32 %v739_v54 }
 0x241   : > { %v762_v56 = vmul.f32 %v754_v53, %v738_v47 }
 0x243   : > { %v730_v58 = vpop.f32.mrf.mxu2  ;;  %v767_v38 = vpack.c.bf16 %v762_v56, %v761_v55 }
 0x244   : > { %v731_v59 = vadd.f32 %v1253_v9, %v730_v58 }
 0x245   : > { %838 = vmatmul.bf16.gmra.mxu3 %v767_v38 }
 0x246   : > { %v740_v61 = vmul.f32 0.5, %v731_v59  ;;  %v1316_v62 = vpop.eup %1315 }
 0x247   : > { %v755_v60 = vadd.f32 1.0, %v1316_v62 }
 0x248   : > { %1317 = vtanh.f32 %v740_v61 }
 0x249   : > { %v763_v4 = vmul.f32 %v755_v60, %v739_v54 }
 0x24e   : > { %v1318_v63 = vpop.eup %1317 }
 0x24f   : > { %v756_v0 = vadd.f32 1.0, %v1318_v63 }
 0x251   : > { %v764_v1 = vmul.f32 %v756_v0, %v740_v61 }
 0x253   : > { %v768_v5 = vpack.c.bf16 %v764_v1, %v763_v4 }
 0x255   : > { %843 = vmatmul.bf16.gmra.mxu3 %v768_v5 }
 0x2a8   : > { %v829_v7 = vpop.f32.mrf.mxu3 }
 0x2a9   : > { %v830_v8 = vadd.f32 %v1254_v41, %v829_v7 }
 0x2ab   : > { %v849_v9 = vadd.f32 %v830_v8, %v1723_v6 }
 0x2ad   : > { %857 = vst [vmem:[%s1760_s26] sm:$0xff] %v849_v9 }
 0x2b0   : > { %v831_v11 = vpop.f32.mrf.mxu3 }
 0x2b1   : > { %v832_v13 = vadd.f32 %v1254_v41, %v831_v11 }
 0x2b3   : > { %v850_v14 = vadd.f32 %v832_v13, %v1727_v10 }
 0x2b5   : > { %858 = vst [vmem:[%s1760_s26 + $0x8] sm:$0xff] %v850_v14 }
 0x2b8   : > { %v834_v16 = vpop.f32.mrf.mxu3 }
 0x2b9   : > { %v835_v18 = vadd.f32 %v1254_v41, %v834_v16 }
 0x2bb   : > { %v851_v2 = vadd.f32 %v835_v18, %v1731_v17 }
 0x2bd   : > { %859 = vst [vmem:[%s1760_s26 + $0x10] sm:$0xff] %v851_v2 }
 0x2c0   : > { %v836_v6 = vpop.f32.mrf.mxu3 }
 0x2c1   : > { %v837_v19 = vadd.f32 %v1254_v41, %v836_v6 }
 0x2c3   : > { %v852_v20 = vadd.f32 %v837_v19, %v1735_v26 }
 0x2c5   : > { %860 = vst [vmem:[%s1760_s26 + $0x18] sm:$0xff] %v852_v20 }
 0x2c8   : > { %v839_v21 = vpop.f32.mrf.mxu3 }
 0x2c9   : > { %v840_v22 = vadd.f32 %v1254_v41, %v839_v21 }
 0x2cb   : > { %v853_v23 = vadd.f32 %v840_v22, %v1739_v31 }
 0x2cd   : > { %861 = vst [vmem:[%s1760_s26 + $0x20] sm:$0xff] %v853_v23 }
 0x2d0   : > { %v841_v10 = vpop.f32.mrf.mxu3 }
 0x2d1   : > { %v842_v24 = vadd.f32 %v1254_v41, %v841_v10 }
 0x2d3   : > { %v854_v3 = vadd.f32 %v842_v24, %v1743_v42 }
 0x2d5   : > { %862 = vst [vmem:[%s1760_s26 + $0x28] sm:$0xff] %v854_v3 }
 0x2d8   : > { %v844_v17 = vpop.f32.mrf.mxu3 }
 0x2d9   : > { %v845_v27 = vadd.f32 %v1254_v41, %v844_v17 }
 0x2db   : > { %v855_v12 = vadd.f32 %v845_v27, %v1747_v48 }
 0x2dd   : > { %863 = vst [vmem:[%s1760_s26 + $0x30] sm:$0xff] %v855_v12 }
 0x2e0   : > { %v846_v26 = vpop.f32.mrf.mxu3 }
 0x2e1   : > { %v847_v31 = vadd.f32 %v1254_v41, %v846_v26 }
 0x2e3   : > { %v856_v42 = vadd.f32 %v847_v31, %v1751_v57 }
 0x2e5   : > { %864 = vst [vmem:[%s1760_s26 + $0x38] sm:$0xff] %v856_v42 }
 0x2e6   : > { %1466 = shalt.err (!%p1463_p10)
}
 0x2e7   : > { %s1524_s17 = smov 128   ;;  %s1525_s23 = smov 8  }
 0x2e8   : > { %1180 = dma.vmem_to_hbm [thread:$0]  (%p1639_p7), %s879_s14, 1024, %s881_s7, %s866_s15, %s1524_s17, %s1524_s17, %s1525_s23  }
 0x2e9 PF: > { %s895_s26 = sand.u32 1, %s1501_s18   ;;  %p1823_p12 = scmp.ge.s32.totalorder %s1513_s21, 2 }
 0x2ea   : > { %s896_s27 = scalar_lea.sflag [#allocation4], %s895_s26 }
 0x2eb   : > { %p1197_p13 = pnand %p1823_p12, %p1591_p6 }
 0x2ed   : > { %p1198_p0 = pneg %p1197_p13 }
 0x2ef   : > { %1496 = dma.done.wait (%p1198_p0), %s896_s27, 1024  }
 0x2f0   : > { %1498 = vsyncadd (%p1198_p0), %s896_s27, 4294966272  ;;  %p20_p3 = scmp.ge.s32.totalorder %s1625_s30, 4   ;;  %s1824_s18 = smov %s1505_s19 }
 0x2f1   : > { %s1825_s19 = smov %s1509_s20  ;;  %s1826_s20 = smov %s1635_s9 }
 0x2f2   : > { %s1827_s21 = smov %s1625_s30  ;;  %22 = sbr.rel (!%p20_p3) target bundleno = 7 (0x7), region = 101 }
 0x2f7   :  { %902 = vsyncpa [#allocation3], 1 }
 0x2f8   :  { %904 = vsyncpa [#allocation3 + $0x1], 1 }
 0x2f9   :  { %905 = vsyncpa [#allocation6], 1 }
 0x2fa   :  { %906 = vsyncpa [#allocation9], 1 }
 0x2fb   :  { %907 = vsyncpa [#allocation4], 1 }
 0x2fc   :  { %909 = vsyncpa [#allocation4 + $0x1], 1 }

</bundles_post_ra>
